<compile_context>
chip_gen: v6e
topology: v6e:2x2x1
jax: 0.10.0
libtpu: 0.0.40
codegen_flags: <defaults>
</compile_context>

<pallas_src>
import functools

import jax
import jax.numpy as jnp
from jax.experimental import pallas as pl
from jax.experimental.pallas import tpu as pltpu


def _round_up(x, m):
    return ((x + m - 1) // m) * m


# ----------------------------------------------------------------------------
# Pallas kernels
# ----------------------------------------------------------------------------
def _apply_epilogue(out, bias_ref, activation):
    if bias_ref is not None:
        out = out + bias_ref[...]
    if activation == "relu":
        out = jnp.maximum(out, 0.0)
    elif activation == "tanh":
        out = jnp.tanh(out)
    return out


def _mm_kernel(*refs, has_bias, activation, multi_k):
    """C = act(A @ B + bias); A cast to bf16 in-kernel, B stored bf16, f32 acc."""
    if multi_k:
        acc_ref = refs[-1]
        refs = refs[:-1]
    if has_bias:
        a_ref, b_ref, bias_ref, o_ref = refs
    else:
        a_ref, b_ref, o_ref = refs
        bias_ref = None

    contrib = jnp.dot(a_ref[...].astype(jnp.bfloat16), b_ref[...],
                      preferred_element_type=jnp.float32)

    if not multi_k:
        o_ref[...] = _apply_epilogue(contrib, bias_ref, activation).astype(o_ref.dtype)
    else:
        k = pl.program_id(2)

        @pl.when(k == 0)
        def _():
            acc_ref[...] = jnp.zeros_like(acc_ref)

        acc_ref[...] += contrib

        @pl.when(k == pl.num_programs(2) - 1)
        def _():
            o_ref[...] = _apply_epilogue(acc_ref[...], bias_ref,
                                         activation).astype(o_ref.dtype)


def pallas_matmul(a, w, activation="none"):
    """act(A @ W + bias).  a: (M, K) f32 activations; w: packed weight dict
    with pre-transposed / pre-padded bf16 matrix of shape (Kp, Np)."""
    M, K = a.shape
    assert K == w["k"], (K, w["k"])
    Kp, Np = w["w"].shape
    N = w["n"]

    if M <= 512:
        Mp = max(8, _round_up(M, 8))
        tm = Mp
    else:
        Mp = _round_up(M, 256)
        tm = 256
    if (M, K) != (Mp, Kp):                        # tiny activation-only pad
        a = jnp.pad(a, ((0, Mp - M), (0, Kp - K)))

    tn = Np if Np <= 512 else next(t for t in (512, 256, 128) if Np % t == 0)
    tk = Kp if Kp <= 2048 else next(t for t in (1024, 512, 256, 128) if Kp % t == 0)
    gm, gn, nk = Mp // tm, Np // tn, Kp // tk

    has_bias = w["bias"] is not None
    operands = [a, w["w"]] + ([w["bias"]] if has_bias else [])

    if nk == 1:
        grid = (gm, gn)
        in_specs = [pl.BlockSpec((tm, Kp), lambda i, j: (i, 0)),
                    pl.BlockSpec((Kp, tn), lambda i, j: (0, j))]
        if has_bias:
            in_specs.append(pl.BlockSpec((1, tn), lambda i, j: (0, j)))
        out_spec = pl.BlockSpec((tm, tn), lambda i, j: (i, j))
        scratch = []
        sem = ("parallel", "parallel")
    else:
        grid = (gm, gn, nk)
        in_specs = [pl.BlockSpec((tm, tk), lambda i, j, k: (i, k)),
                    pl.BlockSpec((tk, tn), lambda i, j, k: (k, j))]
        if has_bias:
            in_specs.append(pl.BlockSpec((1, tn), lambda i, j, k: (0, j)))
        out_spec = pl.BlockSpec((tm, tn), lambda i, j, k: (i, j))
        scratch = [pltpu.VMEM((tm, tn), jnp.float32)]
        sem = ("parallel", "parallel", "arbitrary")

    out = pl.pallas_call(
        functools.partial(_mm_kernel, has_bias=has_bias,
                          activation=activation, multi_k=(nk > 1)),
        out_shape=jax.ShapeDtypeStruct((Mp, Np), jnp.float32),
        grid_spec=pltpu.PrefetchScalarGridSpec(
            num_scalar_prefetch=0, grid=grid,
            in_specs=in_specs, out_specs=out_spec,
            scratch_shapes=scratch),
        compiler_params=pltpu.CompilerParams(dimension_semantics=sem),
    )(*operands)
    return out[:M, :N]


def _affine_kernel(*refs, has_res, res_affine, relu):
    """y = act(x*s + t [+ (r*sr + tr | r)]) — fused BN apply / residual / ReLU."""
    if has_res:
        if res_affine:
            x_ref, s_ref, t_ref, r_ref, rs_ref, rt_ref, o_ref = refs
        else:
            x_ref, s_ref, t_ref, r_ref, o_ref = refs
    else:
        x_ref, s_ref, t_ref, o_ref = refs
    y = x_ref[...] * s_ref[...] + t_ref[...]
    if has_res:
        r = r_ref[...]
        if res_affine:
            r = r * rs_ref[...] + rt_ref[...]
        y = y + r
    if relu:
        y = jnp.maximum(y, 0.0)
    o_ref[...] = y


def _pad2(a, rows, cols):
    if a.shape == (rows, cols):
        return a
    return jnp.pad(a, ((0, rows - a.shape[0]), (0, cols - a.shape[1])))


def pallas_affine(x2d, scale, shift, residual=None, res_scale=None,
                  res_shift=None, relu=True):
    M, C = x2d.shape
    Cp = _round_up(C, 128)
    if M <= 512:
        Mp = max(8, _round_up(M, 8))
        tm = Mp
    else:
        Mp = _round_up(M, 512)
        tm = 512

    operands = [_pad2(x2d, Mp, Cp),
                _pad2(scale.reshape(1, -1), 1, Cp),
                _pad2(shift.reshape(1, -1), 1, Cp)]
    in_specs = [pl.BlockSpec((tm, Cp), lambda i: (i, 0)),
                pl.BlockSpec((1, Cp), lambda i: (0, 0)),
                pl.BlockSpec((1, Cp), lambda i: (0, 0))]
    has_res = residual is not None
    res_affine = res_scale is not None
    if has_res:
        operands.append(_pad2(residual, Mp, Cp))
        in_specs.append(pl.BlockSpec((tm, Cp), lambda i: (i, 0)))
        if res_affine:
            operands += [_pad2(res_scale.reshape(1, -1), 1, Cp),
                         _pad2(res_shift.reshape(1, -1), 1, Cp)]
            in_specs += [pl.BlockSpec((1, Cp), lambda i: (0, 0)),
                         pl.BlockSpec((1, Cp), lambda i: (0, 0))]

    out = pl.pallas_call(
        functools.partial(_affine_kernel, has_res=has_res,
                          res_affine=res_affine, relu=relu),
        out_shape=jax.ShapeDtypeStruct((Mp, Cp), jnp.float32),
        grid_spec=pltpu.PrefetchScalarGridSpec(
            num_scalar_prefetch=0, grid=(Mp // tm,),
            in_specs=in_specs,
            out_specs=pl.BlockSpec((tm, Cp), lambda i: (i, 0))),
        compiler_params=pltpu.CompilerParams(dimension_semantics=("parallel",)),
    )(*operands)
    return out[:M, :C]


def _maxpool_kernel(t_ref, o_ref):
    o_ref[...] = jnp.max(t_ref[...], axis=0)


def pallas_max_over_taps(taps):
    """taps: (T, M, C) -> elementwise max over T (max-pool reduction), row-tiled."""
    T, M, C = taps.shape
    Cp = _round_up(C, 128)
    if M <= 512:
        Mp = max(8, _round_up(M, 8))
        tm = Mp
    else:
        Mp = _round_up(M, 512)
        tm = 512
    if (M, C) != (Mp, Cp):
        taps = jnp.pad(taps, ((0, 0), (0, Mp - M), (0, Cp - C)))
    out = pl.pallas_call(
        _maxpool_kernel,
        out_shape=jax.ShapeDtypeStruct((Mp, Cp), jnp.float32),
        grid_spec=pltpu.PrefetchScalarGridSpec(
            num_scalar_prefetch=0, grid=(Mp // tm,),
            in_specs=[pl.BlockSpec((T, tm, Cp), lambda i: (0, i, 0))],
            out_specs=pl.BlockSpec((tm, Cp), lambda i: (i, 0))),
        compiler_params=pltpu.CompilerParams(dimension_semantics=("parallel",)),
    )(taps)
    return out[:M, :C]


def _log_softmax_kernel(x_ref, o_ref):
    x = x_ref[...]
    m = jnp.max(x, axis=-1, keepdims=True)
    e = jnp.exp(x - m)
    s = jnp.sum(e, axis=-1, keepdims=True)
    o_ref[...] = x - m - jnp.log(s)


def pallas_log_softmax(x):
    M, N = x.shape
    Np = _round_up(N, 128)
    if M <= 256:
        Mp = max(8, _round_up(M, 8))
        tm = Mp
    else:
        Mp = _round_up(M, 256)
        tm = 256
    x_p = jnp.full((Mp, Np), -1e30, jnp.float32).at[:M, :N].set(x)
    out = pl.pallas_call(
        _log_softmax_kernel,
        out_shape=jax.ShapeDtypeStruct((Mp, Np), jnp.float32),
        grid_spec=pltpu.PrefetchScalarGridSpec(
            num_scalar_prefetch=0, grid=(Mp // tm,),
            in_specs=[pl.BlockSpec((tm, Np), lambda i: (i, 0))],
            out_specs=pl.BlockSpec((tm, Np), lambda i: (i, 0))),
        compiler_params=pltpu.CompilerParams(dimension_semantics=("parallel",)),
    )(x_p)
    return out[:M, :N]


def _value_head_kernel(v_ref, w1_ref, b1_ref, w2_ref, b2_ref, o_ref):
    h = jnp.dot(v_ref[...].astype(jnp.bfloat16), w1_ref[...],
                preferred_element_type=jnp.float32)
    h = jnp.maximum(h + b1_ref[...], 0.0)
    o = jnp.dot(h.astype(jnp.bfloat16), w2_ref[...],
                preferred_element_type=jnp.float32)
    o_ref[...] = jnp.tanh(o + b2_ref[...])


def pallas_value_head(v, fc1, fc2):
    """tanh(relu(v @ W1^T + b1) @ W2^T + b2) in one fused kernel."""
    M, K = v.shape
    assert K == fc1["k"]
    Kp, _ = fc1["w"].shape
    _, N2p = fc2["w"].shape
    Mp = max(8, _round_up(M, 8))
    v_p = _pad2(v, Mp, Kp)
    out = pl.pallas_call(
        _value_head_kernel,
        out_shape=jax.ShapeDtypeStruct((Mp, N2p), jnp.float32),
    )(v_p, fc1["w"], fc1["bias"], fc2["w"], fc2["bias"])
    return out[:M, :fc2["n"]]


# ----------------------------------------------------------------------------
# JAX glue: im2col, conv, batchnorm stats, pooling (compute lands in the kernels)
# ----------------------------------------------------------------------------
def _im2col(x, kh, kw, stride, pad):
    # TODO(synk): fold the kh*kw taps into the matmul K-grid (pl.Element offsets on
    # the padded NHWC activation) to avoid materializing patches in HBM.
    N, H, W, C = x.shape
    Ho = (H + 2 * pad - kh) // stride + 1
    Wo = (W + 2 * pad - kw) // stride + 1
    xp = jnp.pad(x, ((0, 0), (pad, pad), (pad, pad), (0, 0)))
    cols = []
    for i in range(kh):
        for j in range(kw):
            cols.append(xp[:, i:i + stride * Ho:stride, j:j + stride * Wo:stride, :])
    patches = jnp.stack(cols, axis=3)                     # (N, Ho, Wo, kh*kw, C)
    return patches.reshape(N * Ho * Wo, kh * kw * C), (N, Ho, Wo)


def conv2d(x, w, stride=1, pad=0, activation="none"):
    """x: NHWC f32; w: packed conv dict (weight pre-transposed/padded, bf16)."""
    kh, kw, Cout = w["kh"], w["kw"], w["n"]
    N, H, W, C = x.shape
    if kh == 1 and kw == 1 and pad == 0:
        if stride != 1:
            x = x[:, ::stride, ::stride, :]
        No, Ho, Wo = x.shape[0], x.shape[1], x.shape[2]
        patches = x.reshape(-1, C)
    else:
        patches, (No, Ho, Wo) = _im2col(x, kh, kw, stride, pad)
    y = pallas_matmul(patches, w, activation)
    return y.reshape(No, Ho, Wo, Cout)


def _bn_scale_shift(y2d, gamma, beta, eps=1e-5):
    # Training-mode BatchNorm2d batch statistics (biased variance, as PyTorch
    # normalizes with).  Tiny per-channel reduction kept in JAX glue; train-mode
    # stats preclude fusing the BN apply into the producing matmul's epilogue.
    mean = jnp.mean(y2d, axis=0)
    var = jnp.mean(jnp.square(y2d - mean), axis=0)
    scale = gamma / jnp.sqrt(var + eps)
    shift = beta - mean * scale
    return scale, shift


def bn_apply(y, gamma, beta, relu=True, residual=None,
             res_gamma=None, res_beta=None, eps=1e-5):
    """Fused BN apply (+ optional residual, which may carry its own BN) (+ ReLU)."""
    shape = y.shape
    C = shape[-1]
    yf = y.reshape(-1, C)
    scale, shift = _bn_scale_shift(yf, gamma, beta, eps)
    res = res_s = res_t = None
    if residual is not None:
        res = residual.reshape(-1, C)
        if res_gamma is not None:
            res_s, res_t = _bn_scale_shift(res, res_gamma, res_beta, eps)
    out = pallas_affine(yf, scale, shift, res, res_s, res_t, relu)
    return out.reshape(shape)


def maxpool_3x3_s2_p1(x):
    N, H, W, C = x.shape
    k, stride, pad = 3, 2, 1
    Ho = (H + 2 * pad - k) // stride + 1
    Wo = (W + 2 * pad - k) // stride + 1
    xp = jnp.pad(x, ((0, 0), (pad, pad), (pad, pad), (0, 0)),
                 constant_values=-jnp.inf)
    taps = [xp[:, i:i + stride * Ho:stride, j:j + stride * Wo:stride, :]
            .reshape(N * Ho * Wo, C)
            for i in range(k) for j in range(k)]
    y = pallas_max_over_taps(jnp.stack(taps, axis=0))
    return y.reshape(N, Ho, Wo, C)


# ----------------------------------------------------------------------------
# Parameter construction (deterministic, synthetic) with one-time weight packing
# ----------------------------------------------------------------------------
class ParamGen:
    def __init__(self, seed):
        self.key = jax.random.PRNGKey(seed)

    def normal(self, shape, scale=0.05):
        self.key, sub = jax.random.split(self.key)
        return scale * jax.random.normal(sub, shape, dtype=jnp.float32)


def pack_conv(w_oihw, bias=None):
    """PyTorch (Cout, Cin, kh, kw) -> bf16 (Kp, Np) with K = kh*kw*Cin, packed once."""
    Cout, Cin, kh, kw = w_oihw.shape
    K = kh * kw * Cin
    wmat = jnp.transpose(w_oihw, (2, 3, 1, 0)).reshape(K, Cout)
    Kp, Np = _round_up(K, 128), _round_up(Cout, 128)
    wp = jnp.zeros((Kp, Np), jnp.bfloat16).at[:K, :Cout].set(wmat.astype(jnp.bfloat16))
    b = None
    if bias is not None:
        b = jnp.zeros((1, Np), jnp.float32).at[0, :Cout].set(bias.astype(jnp.float32))
    return {"w": wp, "k": K, "n": Cout, "kh": kh, "kw": kw, "bias": b}


def pack_linear(w_out_in, bias=None):
    """PyTorch Linear weight (Nout, K) -> bf16 (Kp, Np) = padded W^T, packed once."""
    Nout, K = w_out_in.shape
    Kp, Np = _round_up(K, 128), _round_up(Nout, 128)
    wp = jnp.zeros((Kp, Np), jnp.bfloat16).at[:K, :Nout].set(
        jnp.transpose(w_out_in).astype(jnp.bfloat16))
    b = None
    if bias is not None:
        b = jnp.zeros((1, Np), jnp.float32).at[0, :Nout].set(bias.astype(jnp.float32))
    return {"w": wp, "k": K, "n": Nout, "bias": b}


def make_params(image_channels, num_classes, layers, seed=1):
    pg = ParamGen(seed)
    params = {
        "conv1": pack_conv(pg.normal((64, image_channels, 7, 7))),
        "bn1_g": jnp.ones((64,), jnp.float32),
        "bn1_b": jnp.zeros((64,), jnp.float32),
    }
    in_ch = 64
    all_layers = []
    for (n_blocks, mid, stride) in zip(layers, (64, 128, 256, 512), (1, 2, 2, 2)):
        blks = []
        for bi in range(n_blocks):
            s = stride if bi == 0 else 1
            p = {
                "c1": pack_conv(pg.normal((mid, in_ch, 1, 1))),
                "g1": jnp.ones((mid,), jnp.float32), "b1": jnp.zeros((mid,), jnp.float32),
                "c2": pack_conv(pg.normal((mid, mid, 3, 3))),
                "g2": jnp.ones((mid,), jnp.float32), "b2": jnp.zeros((mid,), jnp.float32),
                "c3": pack_conv(pg.normal((mid * 4, mid, 1, 1))),
                "g3": jnp.ones((mid * 4,), jnp.float32), "b3": jnp.zeros((mid * 4,), jnp.float32),
                "stride": s,
            }
            if s != 1 or in_ch != mid * 4:
                p["cd"] = pack_conv(pg.normal((mid * 4, in_ch, 1, 1)))
                p["gd"] = jnp.ones((mid * 4,), jnp.float32)
                p["bd"] = jnp.zeros((mid * 4,), jnp.float32)
            blks.append(p)
            in_ch = mid * 4
        all_layers.append(blks)
    params["layers"] = all_layers
    params["head"] = pack_linear(pg.normal((128 * 14 * 14, 2048)),
                                 pg.normal((128 * 14 * 14,)))
    params["act_conv1"] = pack_conv(pg.normal((image_channels, 128, 1, 1)),
                                    pg.normal((image_channels,)))
    params["act_fc1"] = pack_linear(pg.normal((num_classes, image_channels * 14 * 14)),
                                    pg.normal((num_classes,)))
    params["val_conv1"] = pack_conv(pg.normal((2, 128, 1, 1)), pg.normal((2,)))
    params["val_fc1"] = pack_linear(pg.normal((64, 2 * 14 * 14)), pg.normal((64,)))
    params["val_fc2"] = pack_linear(pg.normal((1, 64)), pg.normal((1,)))
    return params


# ----------------------------------------------------------------------------
# Forward pass
# ----------------------------------------------------------------------------
def bottleneck_block(x, p):
    identity = x
    y1 = conv2d(x, p["c1"])
    z1 = bn_apply(y1, p["g1"], p["b1"], relu=True)
    y2 = conv2d(z1, p["c2"], stride=p["stride"], pad=1)
    z2 = bn_apply(y2, p["g2"], p["b2"], relu=True)
    y3 = conv2d(z2, p["c3"])
    if "cd" in p:
        yd = conv2d(identity, p["cd"], stride=p["stride"], pad=0)
        out = bn_apply(y3, p["g3"], p["b3"], relu=True,
                       residual=yd, res_gamma=p["gd"], res_beta=p["bd"])
    else:
        out = bn_apply(y3, p["g3"], p["b3"], relu=True, residual=identity)
    return out


def resnet_forward(params, x_nchw, image_channels):
    x = jnp.transpose(x_nchw, (0, 2, 3, 1)).astype(jnp.float32)   # NCHW -> NHWC
    x = conv2d(x, params["conv1"], stride=2, pad=3)
    x = bn_apply(x, params["bn1_g"], params["bn1_b"], relu=True)
    x = maxpool_3x3_s2_p1(x)
    for layer in params["layers"]:
        for p in layer:
            x = bottleneck_block(x, p)
    N = x.shape[0]
    # TODO(synk): AdaptiveAvgPool2d((1,1)) is a trivial 1x1 spatial mean here; kept in JAX glue.
    feat = jnp.mean(x, axis=(1, 2))                               # (N, 2048)
    h = pallas_matmul(feat, params["head"])                       # resnetToHeadLayer
    h = h.reshape(N, 128, 14, 14)                                 # torch .view(-1,128,14,14)
    h = jnp.transpose(h, (0, 2, 3, 1))                            # NHWC for the 1x1 head convs

    # policy head (bias + ReLU fused into the conv matmul epilogue)
    a = conv2d(h, params["act_conv1"], activation="relu")
    a = jnp.transpose(a, (0, 3, 1, 2)).reshape(N, -1)             # torch CHW flatten order
    a = pallas_matmul(a, params["act_fc1"])
    x_act = pallas_log_softmax(a)

    # value head (val_fc1 + ReLU + val_fc2 + tanh fused into one kernel)
    v = conv2d(h, params["val_conv1"], activation="relu")
    v = jnp.transpose(v, (0, 3, 1, 2)).reshape(N, -1)
    x_val = pallas_value_head(v, params["val_fc1"], params["val_fc2"])
    return x_act, x_val


# ----------------------------------------------------------------------------
if __name__ == "__main__":
    batch = 2
    image_channels = 4
    num_classes = 10
    layers = [1, 1, 1, 1]        # tiny bottleneck stack (layers arg of ResNet)
    spatial = 16

    params = make_params(image_channels, num_classes, layers, seed=1)

    key = jax.random.PRNGKey(0)
    x = jax.random.normal(key, (batch, image_channels, spatial, spatial),
                          dtype=jnp.float32)

    x_act, x_val = resnet_forward(params, x, image_channels)
    x_act = jax.block_until_ready(x_act)
    x_val = jax.block_until_ready(x_val)

    assert x_act.shape == (batch, num_classes)
    assert x_val.shape == (batch, 1)
    assert bool(jnp.all(jnp.isfinite(x_act))) and bool(jnp.all(jnp.isfinite(x_val)))
    print("KERNEL_OK")
</pallas_src>

<mosaic_0001>
module attributes {stable_mosaic.version = 11 : i64} {
  func.func @_mm_kernel(%arg0: i32, %arg1: i32, %arg2: memref<128x256xf32, #tpu.memory_space<vmem>>, %arg3: memref<256x128xbf16, #tpu.memory_space<vmem>>, %arg4: memref<128x128xf32, #tpu.memory_space<vmem>>) attributes {dimension_semantics = [#tpu.dimension_semantics<parallel>, #tpu.dimension_semantics<parallel>], iteration_bounds = array<i64: 1, 1>, scalar_prefetch = 0 : i64, scratch_operands = 0 : i64, tpu.core_type = #tpu.core_type<tc>, window_params = [{transform_indices = @transform_0, window_bounds = array<i64: 128, 256>}, {transform_indices = @transform_1, window_bounds = array<i64: 256, 128>}, {transform_indices = @transform_2, window_bounds = array<i64: 128, 128>}]} {
    %c0 = arith.constant 0 : index
    %c0_0 = arith.constant 0 : index
    %0 = vector.load %arg2[%c0, %c0_0] : memref<128x256xf32, #tpu.memory_space<vmem>>, vector<128x256xf32>
    %1 = arith.truncf %0 : vector<128x256xf32> to vector<128x256xbf16>
    %c0_1 = arith.constant 0 : index
    %c0_2 = arith.constant 0 : index
    %2 = vector.load %arg3[%c0_1, %c0_2] : memref<256x128xbf16, #tpu.memory_space<vmem>>, vector<256x128xbf16>
    %cst = arith.constant dense<0.000000e+00> : vector<128x128xf32>
    %3 = tpu.matmul %1, %2, %cst {dimension_numbers = #tpu.dot_dimension_numbers<[1], [0], [0], [1], [0, 0, 1, 1], [], []>} : vector<128x256xbf16>, vector<256x128xbf16>, vector<128x128xf32> -> vector<128x128xf32>
    %c0_3 = arith.constant 0 : index
    %c0_4 = arith.constant 0 : index
    %4 = vector.load %arg4[%c0_3, %c0_4] : memref<128x128xf32, #tpu.memory_space<vmem>>, vector<128x128xf32>
    tpu.vector_store %arg4[%c0_3, %c0_4], %3 {strides = array<i32>} : memref<128x128xf32, #tpu.memory_space<vmem>>, vector<128x128xf32>,
    return
  }
  func.func @transform_0(%arg0: i32, %arg1: i32) -> (i32, i32) {
    %c0_i32 = arith.constant 0 : i32
    %c0_i32_0 = arith.constant 0 : i32
    return %arg0, %c0_i32 : i32, i32
  }
  func.func @transform_1(%arg0: i32, %arg1: i32) -> (i32, i32) {
    %c0_i32 = arith.constant 0 : i32
    %c0_i32_0 = arith.constant 0 : i32
    return %c0_i32, %arg1 : i32, i32
  }
  func.func @transform_2(%arg0: i32, %arg1: i32) -> (i32, i32) {
    %c0_i32 = arith.constant 0 : i32
    return %arg0, %arg1 : i32, i32
  }
}

</mosaic_0001>

<bundles_post_ra>
// kernel: tpu_custom_call.1
= control target key start
LH: loop header
LB: loop body
LE: loop exit
PB: predicated region body
PF: predicated region fallthrough
CT: control target
= control target key end

     0   :  { %7 = vsyncpa [#allocation3], 0  ;;  %s568_s0 = inlined_call_operand.hbm [shape: f32[128,256], index: 0, kind: input, shape index: {}]   ;;  %s569_s1 = inlined_call_operand.hbm [shape: bf16[256,128], index: 1, kind: input, shape index: {}]   ;;  %s570_s2 = inlined_call_operand.hbm [shape: f32[128,128], index: 2, kind: output, shape index: {}]  }
   0x1   :  { %8 = vsyncpa [#allocation6], 0 }
   0x2   :  { %9 = vsyncpa [#allocation4], 0  ;;  %s535_s9 = smov [#allocation2]  }
   0x3   :  { %s15_s10 = sshll.u32 %s535_s9, 4  ;;  %s16_s10 = int_to_ptr.vmem [resolvable:$true] %s15_s10 }
   0x4   :  { %s477_s11 = scalar_lea.vmem %s16_s10, 4096  ;;  %p482_p1 = scmp.lt.s32.totalorder %s16_s10, %s16_s10 }
   0x5   :  { %p478_p0 = scmp.ne.s32.totalorder %s16_s10, %s477_s11  ;;  %p483_p2 = scmp.lt.s32.totalorder %s477_s11, %s477_s11 }
   0x7   :  { %p484_p3 = por %p483_p2, %p482_p1 }
   0x9   :  { %p485_p4 = pnand %p484_p3, %p478_p0 }
   0xb   :  { %488 = shalt.err (!%p485_p4)
}
   0xc   :  { %s536_s12 = smov 256   ;;  %s537_s13 = smov 16  }
   0xd   :  { %21 = dma.hbm_to_vmem [thread:$0]  %s568_s0, 4096, %s16_s10, [#allocation3], %s536_s12, %s536_s12, %s537_s13  }
   0xe   :  { %s538_s16 = smov [#allocation5]  }
   0xf   :  { %s27_s17 = sshll.u32 %s538_s16, 4  ;;  %s28_s17 = int_to_ptr.vmem [resolvable:$true] %s27_s17 }
  0x10   :  { %s497_s18 = scalar_lea.vmem %s28_s17, 2048  ;;  %p502_p6 = scmp.lt.s32.totalorder %s28_s17, %s28_s17 }
  0x11   :  { %p498_p5 = scmp.ne.s32.totalorder %s28_s17, %s497_s18  ;;  %p503_p7 = scmp.lt.s32.totalorder %s497_s18, %s497_s18 }
  0x13   :  { %p504_p8 = por %p503_p7, %p502_p6 }
  0x15   :  { %p505_p9 = pnand %p504_p8, %p498_p5 }
  0x17   :  { %508 = shalt.err (!%p505_p9)
}
  0x18   :  { %s539_s19 = smov 64   ;;  %s540_s20 = smov 4  }
  0x19   :  { %33 = dma.hbm_to_vmem [thread:$0]  %s569_s1, 2048, %s28_s17, [#allocation6], %s539_s19, %s539_s19, %s540_s20  }
  0x1a   :  { %529 = dma.done.wait [#allocation3], 4096  }
  0x1b   :  { %530 = vsyncadd [#allocation3], 4294963200 }
  0x1c   :  { %531 = dma.done.wait [#allocation6], 2048  }
  0x1d   :  { %532 = vsyncadd [#allocation6], 4294965248  ;;  %v453_v0 = vld [vmem:[#allocation5 + $0x78] sm:$0xff]   ;;  %v455_v2 = vld [vmem:[#allocation5 + $0x70] sm:$0xff]   ;;  %s541_s0 = smov [#allocation7]  }
  0x1e   :  { %v454_v1 = vld [vmem:[#allocation5 + $0x38] sm:$0xff]   ;;  %364 = vmatprep.subr.bf16.mxu0 %v453_v0  ;;  %428 = vmatprep.subr.bf16.mxu1 %v453_v0  ;;  %v456_v3 = vld [vmem:[#allocation5 + $0x30] sm:$0xff]   ;;  %v457_v4 = vld [vmem:[#allocation5 + $0x68] sm:$0xff]   ;;  %s335_s1 = sshll.u32 %s541_s0, 4  ;;  %s336_s1 = int_to_ptr.vmem [resolvable:$true] %s335_s1 }
  0x1f   :  { %365 = vmatpush3.bf16.msra.mxu0 %v454_v1  ;;  %436 = vmatpush3.bf16.msra.mxu1 %v454_v1  ;;  %v458_v5 = vld [vmem:[#allocation5 + $0x28] sm:$0xff]   ;;  %v459_v6 = vld [vmem:[#allocation5 + $0x60] sm:$0xff]   ;;  %v461_v8 = vld [vmem:[#allocation5 + $0x58] sm:$0xff]   ;;  %s509_s23 = scalar_lea.vmem %s336_s1, 2048  ;;  %p514_p11 = scmp.lt.s32.totalorder %s336_s1, %s336_s1 }
  0x20   :  { %366 = vmatprep.subr.bf16.mxu0 %v455_v2  ;;  %429 = vmatprep.subr.bf16.mxu1 %v455_v2  ;;  %v460_v7 = vld [vmem:[#allocation5 + $0x20] sm:$0xff]   ;;  %v462_v9 = vld [vmem:[#allocation5 + $0x18] sm:$0xff]   ;;  %v463_v10 = vld [vmem:[#allocation5 + $0x50] sm:$0xff]   ;;  %p510_p10 = scmp.ne.s32.totalorder %s336_s1, %s509_s23  ;;  %p515_p12 = scmp.lt.s32.totalorder %s509_s23, %s509_s23 }
  0x21   :  { %v42_v11 = vld [vmem:[#allocation2 + $0x8] sm:$0xff]  ;;  %v44_v12 = vld [vmem:[#allocation2 + $0x18] sm:$0xff]  ;;  %v464_v17 = vld [vmem:[#allocation5 + $0x10] sm:$0xff]  }
  0x22   :  { %v58_v13 = vld [vmem:[#allocation2 + $0x88] sm:$0xff]  ;;  %v74_v14 = vpack.c.bf16 %v44_v12, %v42_v11  ;;  %v60_v15 = vld [vmem:[#allocation2 + $0x98] sm:$0xff]  ;;  %v467_v20 = vld [vmem:[#allocation5 + $0x40] sm:$0xff]   ;;  %p516_p13 = por %p515_p12, %p514_p11 }
  0x23   :  { %367 = vmatpush3.bf16.msra.mxu0 %v456_v3  ;;  %437 = vmatpush3.bf16.msra.mxu1 %v456_v3  ;;  %v82_v16 = vpack.c.bf16 %v60_v15, %v58_v13  ;;  %v465_v18 = vld [vmem:[#allocation5 + $0x48] sm:$0xff]   ;;  %v468_v21 = vld [vmem:[#allocation5] sm:$0xff]   ;;  %v43_v23 = vld [vmem:[#allocation2 + $0x10] sm:$0xff] }
  0x24   :  { %368 = vmatprep.subr.bf16.mxu0 %v457_v4  ;;  %430 = vmatprep.subr.bf16.mxu1 %v457_v4  ;;  %v466_v19 = vld [vmem:[#allocation5 + $0x8] sm:$0xff]   ;;  %v41_v22 = vld [vmem:[#allocation2] sm:$0xff]  ;;  %v59_v25 = vld [vmem:[#allocation2 + $0x90] sm:$0xff]  ;;  %p517_p0 = pnand %p516_p13, %p510_p10 }
  0x25   :  { %249 = vmatprep.mubr.bf16.mxu0 %v74_v14  ;;  %281 = vmatprep.mubr.bf16.mxu1 %v82_v16  ;;  %v57_v24 = vld [vmem:[#allocation2 + $0x80] sm:$0xff]  ;;  %v46_v26 = vld [vmem:[#allocation2 + $0x28] sm:$0xff]  ;;  %v48_v27 = vld [vmem:[#allocation2 + $0x38] sm:$0xff]  ;;  %v73_v30 = vpack.c.bf16 %v43_v23, %v41_v22 }
  0x26   :  { %v62_v28 = vld [vmem:[#allocation2 + $0xa8] sm:$0xff]  ;;  %v64_v29 = vld [vmem:[#allocation2 + $0xb8] sm:$0xff]  ;;  %v81_v31 = vpack.c.bf16 %v59_v25, %v57_v24  ;;  %v76_v32 = vpack.c.bf16 %v48_v27, %v46_v26  ;;  %v45_v34 = vld [vmem:[#allocation2 + $0x20] sm:$0xff] }
  0x27   :  { %369 = vmatpush3.bf16.msra.mxu0 %v458_v5  ;;  %438 = vmatpush3.bf16.msra.mxu1 %v458_v5  ;;  %v84_v33 = vpack.c.bf16 %v64_v29, %v62_v28  ;;  %v47_v35 = vld [vmem:[#allocation2 + $0x30] sm:$0xff]  ;;  %v61_v36 = vld [vmem:[#allocation2 + $0xa0] sm:$0xff]  ;;  %v50_v38 = vld [vmem:[#allocation2 + $0x48] sm:$0xff] }
  0x28   :  { %370 = vmatprep.subr.bf16.mxu0 %v459_v6  ;;  %431 = vmatprep.subr.bf16.mxu1 %v459_v6  ;;  %v63_v37 = vld [vmem:[#allocation2 + $0xb0] sm:$0xff]  ;;  %v52_v39 = vld [vmem:[#allocation2 + $0x58] sm:$0xff]  ;;  %v66_v40 = vld [vmem:[#allocation2 + $0xc8] sm:$0xff]  ;;  %v75_v42 = vpack.c.bf16 %v47_v35, %v45_v34 }
  0x29   :  { %v68_v41 = vld [vmem:[#allocation2 + $0xd8] sm:$0xff]  ;;  %v83_v43 = vpack.c.bf16 %v63_v37, %v61_v36  ;;  %v78_v44 = vpack.c.bf16 %v52_v39, %v50_v38  ;;  %v49_v46 = vld [vmem:[#allocation2 + $0x40] sm:$0xff]  ;;  %v51_v47 = vld [vmem:[#allocation2 + $0x50] sm:$0xff] }
  0x2a   :  { %v86_v45 = vpack.c.bf16 %v68_v41, %v66_v40  ;;  %v65_v48 = vld [vmem:[#allocation2 + $0xc0] sm:$0xff]  ;;  %v67_v49 = vld [vmem:[#allocation2 + $0xd0] sm:$0xff]  ;;  %v54_v50 = vld [vmem:[#allocation2 + $0x68] sm:$0xff]  ;;  %v77_v54 = vpack.c.bf16 %v51_v47, %v49_v46 }
  0x2b   :  { %371 = vmatpush3.bf16.msra.mxu0 %v460_v7  ;;  %439 = vmatpush3.bf16.msra.mxu1 %v460_v7  ;;  %v56_v51 = vld [vmem:[#allocation2 + $0x78] sm:$0xff]  ;;  %v70_v52 = vld [vmem:[#allocation2 + $0xe8] sm:$0xff]  ;;  %v85_v55 = vpack.c.bf16 %v67_v49, %v65_v48  ;;  %v53_v58 = vld [vmem:[#allocation2 + $0x60] sm:$0xff] }
  0x2c   :  { %372 = vmatprep.subr.bf16.mxu0 %v461_v8  ;;  %432 = vmatprep.subr.bf16.mxu1 %v461_v8  ;;  %v72_v53 = vld [vmem:[#allocation2 + $0xf8] sm:$0xff]  ;;  %v80_v56 = vpack.c.bf16 %v56_v51, %v54_v50  ;;  %v55_v59 = vld [vmem:[#allocation2 + $0x70] sm:$0xff]  ;;  %v69_v60 = vld [vmem:[#allocation2 + $0xe0] sm:$0xff] }
  0x2d   :  { %v88_v57 = vpack.c.bf16 %v72_v53, %v70_v52  ;;  %v71_v61 = vld [vmem:[#allocation2 + $0xf0] sm:$0xff]  ;;  %v79_v62 = vpack.c.bf16 %v55_v59, %v53_v58 }
  0x2e   :  { %v87_v63 = vpack.c.bf16 %v71_v61, %v69_v60 }
  0x2f   :  { %373 = vmatpush3.bf16.msra.mxu0 %v462_v9  ;;  %440 = vmatpush3.bf16.msra.mxu1 %v462_v9 }
  0x30   :  { %374 = vmatprep.subr.bf16.mxu0 %v463_v10  ;;  %433 = vmatprep.subr.bf16.mxu1 %v463_v10 }
  0x33   :  { %375 = vmatpush3.bf16.msra.mxu0 %v464_v17  ;;  %441 = vmatpush3.bf16.msra.mxu1 %v464_v17 }
  0x34   :  { %376 = vmatprep.subr.bf16.mxu0 %v465_v18  ;;  %434 = vmatprep.subr.bf16.mxu1 %v465_v18 }
  0x37   :  { %377 = vmatpush3.bf16.msra.mxu0 %v466_v19  ;;  %442 = vmatpush3.bf16.msra.mxu1 %v466_v19 }
  0x38   :  { %378 = vmatprep.subr.bf16.mxu0 %v467_v20  ;;  %435 = vmatprep.subr.bf16.mxu1 %v467_v20 }
  0x3b   :  { %379 = vmatpush3.bf16.msra.mxu0 %v468_v21  ;;  %443 = vmatpush3.bf16.msra.mxu1 %v468_v21 }
  0x3e   :  { %250 = vmatmul.mubr.bf16.vlgmr.msra.gmra.mxu0 %v73_v30  ;;  %282 = vmatmul.mubr.bf16.vlgmr.msra.gmra.mxu1 %v81_v31 }
  0x3f   :  { %257 = vmatprep.mubr.bf16.mxu0 %v76_v32  ;;  %289 = vmatprep.mubr.bf16.mxu1 %v84_v33 }
  0x46   :  { %258 = vmatmul.mubr.bf16.gmra.mxu0 %v75_v42  ;;  %290 = vmatmul.mubr.bf16.gmra.mxu1 %v83_v43 }
  0x47   :  { %265 = vmatprep.mubr.bf16.mxu0 %v78_v44  ;;  %297 = vmatprep.mubr.bf16.mxu1 %v86_v45 }
  0x4e   :  { %266 = vmatmul.mubr.bf16.gmra.mxu0 %v77_v54  ;;  %298 = vmatmul.mubr.bf16.gmra.mxu1 %v85_v55 }
  0x4f   :  { %273 = vmatprep.mubr.bf16.mxu0 %v80_v56  ;;  %305 = vmatprep.mubr.bf16.mxu1 %v88_v57 }
  0x56   :  { %274 = vmatmul.mubr.bf16.gmra.mxu0 %v79_v62  ;;  %306 = vmatmul.mubr.bf16.gmra.mxu1 %v87_v63 }
  0xfe   :  { %v380_v0 = vpop.f32.mrf.mxu0  ;;  %v404_v1 = vpop.f32.mrf.mxu1 }
 0x100   :  { %v381_v2 = vpop.f32.mrf.mxu0  ;;  %v405_v3 = vpop.f32.mrf.mxu1 }
 0x101   :  { %v382_v4 = vadd.f32 %v381_v2, %v380_v0  ;;  %v406_v5 = vadd.f32 %v405_v3, %v404_v1 }
 0x102   :  { %v383_v6 = vpop.f32.mrf.mxu0  ;;  %v407_v7 = vpop.f32.mrf.mxu1 }
 0x103   :  { %314 = vst [vmem:[#allocation7] sm:$0xff] %v382_v4  ;;  %322 = vst [vmem:[#allocation7 + $0x40] sm:$0xff] %v406_v5 }
 0x104   :  { %v384_v8 = vpop.f32.mrf.mxu0  ;;  %v408_v9 = vpop.f32.mrf.mxu1 }
 0x105   :  { %v385_v10 = vadd.f32 %v384_v8, %v383_v6  ;;  %v409_v11 = vadd.f32 %v408_v9, %v407_v7 }
 0x106   :  { %v386_v12 = vpop.f32.mrf.mxu0  ;;  %v410_v13 = vpop.f32.mrf.mxu1 }
 0x107   :  { %315 = vst [vmem:[#allocation7 + $0x8] sm:$0xff] %v385_v10  ;;  %323 = vst [vmem:[#allocation7 + $0x48] sm:$0xff] %v409_v11 }
 0x108   :  { %v387_v14 = vpop.f32.mrf.mxu0  ;;  %v411_v15 = vpop.f32.mrf.mxu1 }
 0x109   :  { %v388_v16 = vadd.f32 %v387_v14, %v386_v12  ;;  %v412_v17 = vadd.f32 %v411_v15, %v410_v13 }
 0x10a   :  { %v389_v18 = vpop.f32.mrf.mxu0  ;;  %v413_v19 = vpop.f32.mrf.mxu1 }
 0x10b   :  { %316 = vst [vmem:[#allocation7 + $0x10] sm:$0xff] %v388_v16  ;;  %324 = vst [vmem:[#allocation7 + $0x50] sm:$0xff] %v412_v17 }
 0x10c   :  { %v390_v20 = vpop.f32.mrf.mxu0  ;;  %v414_v21 = vpop.f32.mrf.mxu1 }
 0x10d   :  { %v391_v22 = vadd.f32 %v390_v20, %v389_v18  ;;  %v415_v23 = vadd.f32 %v414_v21, %v413_v19 }
 0x10e   :  { %v392_v24 = vpop.f32.mrf.mxu0  ;;  %v416_v25 = vpop.f32.mrf.mxu1 }
 0x10f   :  { %317 = vst [vmem:[#allocation7 + $0x18] sm:$0xff] %v391_v22  ;;  %325 = vst [vmem:[#allocation7 + $0x58] sm:$0xff] %v415_v23 }
 0x110   :  { %v393_v26 = vpop.f32.mrf.mxu0  ;;  %v417_v27 = vpop.f32.mrf.mxu1 }
 0x111   :  { %v394_v28 = vadd.f32 %v393_v26, %v392_v24  ;;  %v418_v29 = vadd.f32 %v417_v27, %v416_v25 }
 0x112   :  { %v395_v30 = vpop.f32.mrf.mxu0  ;;  %v419_v31 = vpop.f32.mrf.mxu1 }
 0x113   :  { %318 = vst [vmem:[#allocation7 + $0x20] sm:$0xff] %v394_v28  ;;  %326 = vst [vmem:[#allocation7 + $0x60] sm:$0xff] %v418_v29 }
 0x114   :  { %v396_v32 = vpop.f32.mrf.mxu0  ;;  %v420_v33 = vpop.f32.mrf.mxu1 }
 0x115   :  { %v397_v34 = vadd.f32 %v396_v32, %v395_v30  ;;  %v421_v35 = vadd.f32 %v420_v33, %v419_v31 }
 0x116   :  { %v398_v36 = vpop.f32.mrf.mxu0  ;;  %v422_v37 = vpop.f32.mrf.mxu1 }
 0x117   :  { %319 = vst [vmem:[#allocation7 + $0x28] sm:$0xff] %v397_v34  ;;  %327 = vst [vmem:[#allocation7 + $0x68] sm:$0xff] %v421_v35 }
 0x118   :  { %v399_v38 = vpop.f32.mrf.mxu0  ;;  %v423_v39 = vpop.f32.mrf.mxu1 }
 0x119   :  { %v400_v40 = vadd.f32 %v399_v38, %v398_v36  ;;  %v424_v41 = vadd.f32 %v423_v39, %v422_v37 }
 0x11a   :  { %v401_v42 = vpop.f32.mrf.mxu0  ;;  %v425_v43 = vpop.f32.mrf.mxu1 }
 0x11b   :  { %320 = vst [vmem:[#allocation7 + $0x30] sm:$0xff] %v400_v40  ;;  %328 = vst [vmem:[#allocation7 + $0x70] sm:$0xff] %v424_v41 }
 0x11c   :  { %v402_v44 = vpop.f32.mrf.mxu0  ;;  %v426_v45 = vpop.f32.mrf.mxu1 }
 0x11d   :  { %v403_v46 = vadd.f32 %v402_v44, %v401_v42  ;;  %v427_v47 = vadd.f32 %v426_v45, %v425_v43 }
 0x11f   :  { %321 = vst [vmem:[#allocation7 + $0x38] sm:$0xff] %v403_v46  ;;  %329 = vst [vmem:[#allocation7 + $0x78] sm:$0xff] %v427_v47 }
 0x120   :  { %520 = shalt.err (!%p517_p0)
}
 0x121   :  { %s542_s24 = smov 128   ;;  %s543_s25 = smov 8  }
 0x122   :  { %341 = dma.vmem_to_hbm [thread:$0]  %s336_s1, 2048, %s570_s2, [#allocation4], %s542_s24, %s542_s24, %s543_s25  }
 0x123   :  { %533 = dma.done.wait [#allocation4], 2048  }
 0x124   :  { %534 = vsyncadd [#allocation4], 4294965248 }
 0x125   :  { %345 = vsyncpa [#allocation3], 1 }
 0x126   :  { %346 = vsyncpa [#allocation6], 1 }
 0x127   :  { %347 = vsyncpa [#allocation4], 1 }

</bundles_post_ra>
